<compile_context>
chip_gen: v5e
topology: v5e:2x2
jax: 0.10.0
libtpu: 0.0.40
codegen_flags: <defaults>
</compile_context>

<pallas_src>
import math
from functools import partial

import jax
import jax.numpy as jnp
import numpy as np
from jax.experimental import pallas as pl
from jax.experimental.pallas import tpu as pltpu


# ---------------------------------------------------------------------------
# helpers used inside the kernel
# ---------------------------------------------------------------------------
def _layernorm(v, w, b, eps=1e-5):
    mu = jnp.mean(v, axis=-1, keepdims=True)
    var = jnp.mean((v - mu) ** 2, axis=-1, keepdims=True)
    return (v - mu) * jax.lax.rsqrt(var + eps) * w + b


def _softmax_rows(s):
    s = s - jnp.max(s, axis=-1, keepdims=True)
    p = jnp.exp(s)
    return p * pl.reciprocal(jnp.sum(p, axis=-1, keepdims=True), approx=True)


# ---------------------------------------------------------------------------
# kernel: one ResidualAttentionBlock, grid = (batch tiles, ff chunks)
# ---------------------------------------------------------------------------
def _residual_block_kernel(x_ref,
                           ln1_w_ref, ln1_b_ref,
                           wqkv_ref, bqkv_ref,
                           wo_ref, bo_ref,
                           ln2_w_ref, ln2_b_ref,
                           wfc_ref, bfc_ref,
                           wproj_ref, bproj_ref,
                           *rest, n_head, use_mask, gelu_bf16):
    if use_mask:
        mask_ref, o_ref, xres_ref, h2ln_ref, acc_ref = rest
    else:
        mask_ref = None
        o_ref, xres_ref, h2ln_ref, acc_ref = rest

    j = pl.program_id(1)
    bf = jnp.bfloat16
    B, L, D = x_ref.shape
    dh = D // n_head
    BL = B * L

    # -------- ff chunk 0: attention branch + LN2, parked in VMEM scratch ----
    @pl.when(j == 0)
    def _attention():
        x = x_ref[...].astype(jnp.float32).reshape(BL, D)
        h = _layernorm(x, ln1_w_ref[...], ln1_b_ref[...]).astype(bf)
        # single bf16 QKV slab (1/sqrt(dh) already folded into the Q columns)
        qkv = (jnp.dot(h, wqkv_ref[...], preferred_element_type=jnp.float32)
               + bqkv_ref[...]).astype(bf)                       # (BL, 3D) bf16
        qkv = qkv.reshape(B, L, 3 * D)

        head_outs = []
        for hh in range(n_head):              # tiny fixed trip count -> unroll
            q = qkv[:, :, hh * dh:(hh + 1) * dh]                 # (B, L, dh)
            k = qkv[:, :, D + hh * dh:D + (hh + 1) * dh]
            v = qkv[:, :, 2 * D + hh * dh:2 * D + (hh + 1) * dh]
            s = jnp.einsum("bqd,bkd->bqk", q, k,
                           preferred_element_type=jnp.float32)   # (B, L, L) f32
            if use_mask:
                # (L, L) additive mask, head-/sample-independent (CLIP causal)
                s = s + mask_ref[...][None, :, :]
            p = _softmax_rows(s).astype(bf)
            head_outs.append(jnp.einsum("bqk,bkd->bqd", p, v,
                                        preferred_element_type=jnp.float32))
        attn = jnp.concatenate(head_outs, axis=-1).reshape(BL, D).astype(bf)
        attn = jnp.dot(attn, wo_ref[...],
                       preferred_element_type=jnp.float32) + bo_ref[...]

        xres = x + attn                                          # f32 residual
        xres_ref[...] = xres
        h2ln_ref[...] = _layernorm(xres, ln2_w_ref[...],
                                   ln2_b_ref[...]).astype(bf)
        acc_ref[...] = jnp.zeros_like(acc_ref)

    # -------- every ff chunk: c_fc slice -> QuickGELU -> c_proj partial -----
    h2 = jnp.dot(h2ln_ref[...], wfc_ref[...],
                 preferred_element_type=jnp.float32) + bfc_ref[...]
    if gelu_bf16:
        h2 = h2.astype(bf)
        g = h2 * jax.nn.sigmoid(1.702 * h2)          # bf16 VPU/EUP (v6e/v7x)
    else:
        g = (h2 * jax.nn.sigmoid(1.702 * h2)).astype(bf)          # f32 (v5e)
    acc_ref[...] += jnp.dot(g, wproj_ref[...],
                            preferred_element_type=jnp.float32)

    # -------- last ff chunk: finalize the block output ----------------------
    @pl.when(j == pl.num_programs(1) - 1)
    def _finalize():
        out = xres_ref[...] + acc_ref[...] + bproj_ref[...]
        o_ref[...] = out.reshape(B, L, D).astype(o_ref.dtype)


# ---------------------------------------------------------------------------
# generation-aware planning
# ---------------------------------------------------------------------------
def _vmem_capacity_bytes():
    try:                                  # preferred: ask the toolchain
        return int(pltpu.get_tpu_info().vmem_capacity_bytes)
    except Exception:
        pass
    try:
        kind = jax.devices()[0].device_kind.lower()
    except Exception:
        kind = ""
    if "v7" in kind or "7x" in kind:
        return 64 << 20
    if "v2" in kind or "v3" in kind:
        return 32 << 20
    return 128 << 20                      # v4 / v5e / v5p / v6e


def _has_bf16_vpu():
    try:
        kind = jax.devices()[0].device_kind.lower()
    except Exception:
        return False
    return not any(t in kind for t in ("v2", "v3", "v4", "v5"))


def _choose_tiling(N, L, D, n_head):
    """Pick (b_tile, ff_chunk, vmem_limit_bytes) for an (N, L, D) problem."""
    capacity = _vmem_capacity_bytes()
    budget = max(capacity - (8 << 20), 16 << 20)      # ~8 MiB compiler headroom

    # --- ff chunk: lane-aligned slice of the 4*D hidden dim -----------------
    dff = 4 * D
    cands = [c for c in range(128, dff + 1, 128) if dff % c == 0] or [dff]
    ff_chunk = cands[0]
    for c in cands:
        # c_fc + c_proj chunk weights (bf16), double-buffered by the pipeline
        if c <= 2048 and 2 * (2 * D * c * 2) <= budget // 3:
            ff_chunk = c

    # --- batch tile: ~512 matmul rows, VMEM permitting, grid >= 2 if we can -
    w_fixed = (2 * (4 * D * D) * 2              # wqkv + wo (bf16, 2 buffers)
               + 2 * (2 * D * ff_chunk) * 2     # wfc/wproj chunks (bf16, 2 bufs)
               + 32 * D * 4)                    # biases / LN params (f32)
    per_row = (D * 4 * 2 * 2                    # x / out blocks (f32, 2 buffers)
               + D * 10                         # xres(f32)+acc(f32)+ln2(bf16)
               + 3 * D * 2 * 2                  # qkv slab + working bf16 copies
               + ff_chunk * 6                   # c_fc out (f32) + gelu (bf16)
               + n_head * L * 6)                # per-head scores / probs
    avail = max(budget - w_fixed, 2 << 20)
    max_rows = max(L, int(avail // max(per_row, 1)))
    max_b = max(1, min(N, max_rows // L))

    target_b = max(1, min(max_b, -(-512 // L)))       # aim for ~512 rows / step
    divisors = [d for d in range(1, N + 1) if N % d == 0]
    fits = [d for d in divisors if d <= max_b] or [1]
    pref = ([d for d in fits if d <= target_b and N // d >= 2]
            or [d for d in fits if N // d >= 2]
            or [d for d in fits if d <= target_b]
            or fits)
    b_tile = max(pref)

    est = w_fixed + b_tile * L * per_row + (4 << 20)
    vmem_limit = None
    if est > (16 << 20) and budget > (32 << 20):
        vmem_limit = int(min(max(est + est // 2, 32 << 20), budget))
    return b_tile, ff_chunk, vmem_limit


# ---------------------------------------------------------------------------
# wrappers
# ---------------------------------------------------------------------------
def residual_block(x_nld, params, n_head, attn_mask=None, gelu_bf16=False):
    """One ResidualAttentionBlock on (N, L, D) input with kernel-ready params."""
    N, L, D = x_nld.shape
    assert D % n_head == 0
    b_tile, ff_chunk, vmem_limit = _choose_tiling(N, L, D, n_head)
    assert N % b_tile == 0 and (4 * D) % ff_chunk == 0

    (ln1w, ln1b, wqkv, bqkv, wo, bo, ln2w, ln2b, wfc, bfc, wproj, bproj) = params

    def const_spec(arr):
        r = arr.ndim
        return pl.BlockSpec(arr.shape, lambda n, j, _r=r: (0,) * _r)

    in_specs = [
        pl.BlockSpec((b_tile, L, D), lambda n, j: (n, 0, 0)),      # activations
        const_spec(ln1w), const_spec(ln1b),
        const_spec(wqkv), const_spec(bqkv),
        const_spec(wo), const_spec(bo),
        const_spec(ln2w), const_spec(ln2b),
        pl.BlockSpec((D, ff_chunk), lambda n, j: (0, j)),          # c_fc chunk
        pl.BlockSpec((1, ff_chunk), lambda n, j: (0, j)),
        pl.BlockSpec((ff_chunk, D), lambda n, j: (j, 0)),          # c_proj chunk
        const_spec(bproj),
    ]
    args = [x_nld, ln1w, ln1b, wqkv, bqkv, wo, bo, ln2w, ln2b,
            wfc, bfc, wproj, bproj]

    use_mask = attn_mask is not None
    if use_mask:
        in_specs.append(const_spec(attn_mask))
        args.append(attn_mask.astype(jnp.float32))

    kernel = partial(_residual_block_kernel, n_head=n_head,
                     use_mask=use_mask, gelu_bf16=gelu_bf16)

    return pl.pallas_call(
        kernel,
        out_shape=jax.ShapeDtypeStruct((N, L, D), x_nld.dtype),
        grid=(N // b_tile, (4 * D) // ff_chunk),
        in_specs=in_specs,
        out_specs=pl.BlockSpec((b_tile, L, D), lambda n, j: (n, 0, 0)),
        scratch_shapes=[
            pltpu.VMEM((b_tile * L, D), jnp.float32),     # post-attn residual
            pltpu.VMEM((b_tile * L, D), jnp.bfloat16),    # LN2(x), bf16
            pltpu.VMEM((b_tile * L, D), jnp.float32),     # c_proj accumulator
        ],
        compiler_params=pltpu.CompilerParams(
            dimension_semantics=("parallel", "arbitrary"),
            vmem_limit_bytes=vmem_limit),
    )(*args)


def prepare_layer_params(p, n_head):
    """PyTorch-layout f32 params -> kernel params: transpose to x@W form, fold
    the 1/sqrt(dh) attention scale into the Q columns, cast weights to bf16
    (biases / LN params stay f32)."""
    (ln1w, ln1b, in_w, in_b, out_w, out_b,
     ln2w, ln2b, fc_w, fc_b, proj_w, proj_b) = p
    D = ln1w.shape[0]
    dh = D // n_head
    scale = 1.0 / math.sqrt(dh)
    col_scale = jnp.concatenate([jnp.full((D,), scale, jnp.float32),
                                 jnp.ones((2 * D,), jnp.float32)])
    wqkv = (in_w.T * col_scale[None, :]).astype(jnp.bfloat16)       # (D, 3D)
    bqkv = (in_b * col_scale).reshape(1, 3 * D).astype(jnp.float32)
    return (
        ln1w.reshape(1, D).astype(jnp.float32), ln1b.reshape(1, D).astype(jnp.float32),
        wqkv, bqkv,
        out_w.T.astype(jnp.bfloat16), out_b.reshape(1, D).astype(jnp.float32),
        ln2w.reshape(1, D).astype(jnp.float32), ln2b.reshape(1, D).astype(jnp.float32),
        fc_w.T.astype(jnp.bfloat16), fc_b.reshape(1, 4 * D).astype(jnp.float32),
        proj_w.T.astype(jnp.bfloat16), proj_b.reshape(1, D).astype(jnp.float32),
    )


def transformer_forward(x_lnd, torch_layer_params, n_head, attn_mask=None):
    """PyTorch convention input: (L, N, D). Returns (L, N, D)."""
    prepped = [prepare_layer_params(p, n_head) for p in torch_layer_params]
    gelu_bf16 = _has_bf16_vpu()
    mask = None if attn_mask is None else attn_mask.astype(jnp.float32)

    @jax.jit
    def run(x_lnd, prepped, mask):
        x = jnp.transpose(x_lnd, (1, 0, 2))            # (N, L, D) for the kernel
        for p in prepped:
            x = residual_block(x, p, n_head, attn_mask=mask,
                               gelu_bf16=gelu_bf16)
        return jnp.transpose(x, (1, 0, 2))

    return run(x_lnd, prepped, mask)


# ---------------------------------------------------------------------------
# synthetic params (PyTorch layout) + pure-JAX f32 reference
# ---------------------------------------------------------------------------
def init_params(key, D, layers):
    params = []
    s = 0.02
    for i in range(layers):
        ks = jax.random.split(jax.random.fold_in(key, i), 8)
        p = (
            jnp.ones((D,), jnp.float32), jnp.zeros((D,), jnp.float32),   # ln_1
            jax.random.normal(ks[0], (3 * D, D), jnp.float32) * s,       # in_proj_weight
            jax.random.normal(ks[1], (3 * D,), jnp.float32) * s,         # in_proj_bias
            jax.random.normal(ks[2], (D, D), jnp.float32) * s,           # out_proj.weight
            jax.random.normal(ks[3], (D,), jnp.float32) * s,             # out_proj.bias
            jnp.ones((D,), jnp.float32), jnp.zeros((D,), jnp.float32),   # ln_2
            jax.random.normal(ks[4], (4 * D, D), jnp.float32) * s,       # c_fc.weight
            jax.random.normal(ks[5], (4 * D,), jnp.float32) * s,         # c_fc.bias
            jax.random.normal(ks[6], (D, 4 * D), jnp.float32) * s,       # c_proj.weight
            jax.random.normal(ks[7], (D,), jnp.float32) * s,             # c_proj.bias
        )
        params.append(p)
    return params


def ref_block(x, p, n_head, attn_mask=None):
    """Pure-JAX f32 reference of one ResidualAttentionBlock on (N, L, D)."""
    (ln1w, ln1b, in_w, in_b, out_w, out_b,
     ln2w, ln2b, fc_w, fc_b, proj_w, proj_b) = p
    N, L, D = x.shape
    dh = D // n_head

    def ln(v, w, b):
        mu = v.mean(-1, keepdims=True)
        var = ((v - mu) ** 2).mean(-1, keepdims=True)
        return (v - mu) / jnp.sqrt(var + 1e-5) * w + b

    h = ln(x, ln1w, ln1b)
    qkv = h @ in_w.T + in_b
    q, k, v = jnp.split(qkv, 3, axis=-1)
    q = q.reshape(N, L, n_head, dh).transpose(0, 2, 1, 3) / math.sqrt(dh)
    k = k.reshape(N, L, n_head, dh).transpose(0, 2, 1, 3)
    v = v.reshape(N, L, n_head, dh).transpose(0, 2, 1, 3)
    s = q @ jnp.swapaxes(k, -1, -2)
    if attn_mask is not None:
        s = s + attn_mask[None, None, :, :]
    pr = jax.nn.softmax(s, axis=-1)
    o = (pr @ v).transpose(0, 2, 1, 3).reshape(N, L, D)
    o = o @ out_w.T + out_b
    x = x + o
    h2 = ln(x, ln2w, ln2b)
    h2 = h2 @ fc_w.T + fc_b
    h2 = h2 * jax.nn.sigmoid(1.702 * h2)
    h2 = h2 @ proj_w.T + proj_b
    return x + h2


if __name__ == "__main__":
    # small shapes consistent with the module: seq=8, batch=2, width=32, heads=4, layers=2
    L, N, D, H, LAYERS = 8, 2, 32, 4, 2
    key = jax.random.PRNGKey(0)
    kx, kp = jax.random.split(key)
    x = jax.random.normal(kx, (L, N, D), jnp.float32)
    torch_params = init_params(kp, D, LAYERS)

    # CLIP-style causal mask (also exercise the unmasked path)
    causal = jnp.triu(jnp.full((L, L), float("-inf"), jnp.float32), k=1)

    for mask in (None, causal):
        out = jax.block_until_ready(
            transformer_forward(x, torch_params, H, attn_mask=mask))
        assert out.shape == (L, N, D)

        ref = jnp.transpose(x, (1, 0, 2))
        for p in torch_params:
            ref = ref_block(ref, p, H, attn_mask=mask)
        ref = jnp.transpose(ref, (1, 0, 2))
        np.testing.assert_allclose(np.asarray(out), np.asarray(ref),
                                   atol=2e-2, rtol=2e-2)

    print("KERNEL_OK")
</pallas_src>

<mosaic_0001>
module attributes {stable_mosaic.version = 11 : i64} {
  func.func @_residual_block_kernel(%arg0: i32, %arg1: i32, %arg2: memref<1x8x32xf32, #tpu.memory_space<vmem>>, %arg3: memref<1x32xf32, #tpu.memory_space<vmem>>, %arg4: memref<1x32xf32, #tpu.memory_space<vmem>>, %arg5: memref<32x96xbf16, #tpu.memory_space<vmem>>, %arg6: memref<1x96xf32, #tpu.memory_space<vmem>>, %arg7: memref<32x32xbf16, #tpu.memory_space<vmem>>, %arg8: memref<1x32xf32, #tpu.memory_space<vmem>>, %arg9: memref<1x32xf32, #tpu.memory_space<vmem>>, %arg10: memref<1x32xf32, #tpu.memory_space<vmem>>, %arg11: memref<32x128xbf16, #tpu.memory_space<vmem>>, %arg12: memref<1x128xf32, #tpu.memory_space<vmem>>, %arg13: memref<128x32xbf16, #tpu.memory_space<vmem>>, %arg14: memref<1x32xf32, #tpu.memory_space<vmem>>, %arg15: memref<1x8x32xf32, #tpu.memory_space<vmem>>, %arg16: memref<8x32xf32, #tpu.memory_space<vmem>>, %arg17: memref<8x32xbf16, #tpu.memory_space<vmem>>, %arg18: memref<8x32xf32, #tpu.memory_space<vmem>>) attributes {dimension_semantics = [#tpu.dimension_semantics<parallel>, #tpu.dimension_semantics<arbitrary>], iteration_bounds = array<i64: 2, 1>, scalar_prefetch = 0 : i64, scratch_operands = 3 : i64, tpu.core_type = #tpu.core_type<tc>, window_params = [{transform_indices = @transform_0, window_bounds = array<i64: 1, 8, 32>}, {pipeline_mode = #tpu.pipeline_mode<synchronous>, transform_indices = @transform_1, window_bounds = array<i64: 1, 32>}, {pipeline_mode = #tpu.pipeline_mode<synchronous>, transform_indices = @transform_2, window_bounds = array<i64: 1, 32>}, {pipeline_mode = #tpu.pipeline_mode<synchronous>, transform_indices = @transform_3, window_bounds = array<i64: 32, 96>}, {pipeline_mode = #tpu.pipeline_mode<synchronous>, transform_indices = @transform_4, window_bounds = array<i64: 1, 96>}, {pipeline_mode = #tpu.pipeline_mode<synchronous>, transform_indices = @transform_5, window_bounds = array<i64: 32, 32>}, {pipeline_mode = #tpu.pipeline_mode<synchronous>, transform_indices = @transform_6, window_bounds = array<i64: 1, 32>}, {pipeline_mode = #tpu.pipeline_mode<synchronous>, transform_indices = @transform_7, window_bounds = array<i64: 1, 32>}, {pipeline_mode = #tpu.pipeline_mode<synchronous>, transform_indices = @transform_8, window_bounds = array<i64: 1, 32>}, {transform_indices = @transform_9, window_bounds = array<i64: 32, 128>}, {transform_indices = @transform_10, window_bounds = array<i64: 1, 128>}, {transform_indices = @transform_11, window_bounds = array<i64: 128, 32>}, {pipeline_mode = #tpu.pipeline_mode<synchronous>, transform_indices = @transform_12, window_bounds = array<i64: 1, 32>}, {transform_indices = @transform_13, window_bounds = array<i64: 1, 8, 32>}]} {
    %c0_i32 = arith.constant 0 : i32
    %0 = arith.cmpi eq, %arg1, %c0_i32 : i32
    %1 = arith.extui %0 : i1 to i32
    %c0_i32_0 = arith.constant 0 : i32
    %2 = arith.cmpi ne, %1, %c0_i32_0 : i32
    scf.if %2 {
      %c0_17 = arith.constant 0 : index
      %c0_18 = arith.constant 0 : index
      %c0_19 = arith.constant 0 : index
      %26 = vector.load %arg2[%c0_17, %c0_18, %c0_19] : memref<1x8x32xf32, #tpu.memory_space<vmem>>, vector<1x8x32xf32>
      %27 = vector.shape_cast %26 : vector<1x8x32xf32> to vector<8x32xf32>
      %c0_20 = arith.constant 0 : index
      %c0_21 = arith.constant 0 : index
      %28 = vector.load %arg3[%c0_20, %c0_21] : memref<1x32xf32, #tpu.memory_space<vmem>>, vector<1x32xf32>
      %c0_22 = arith.constant 0 : index
      %c0_23 = arith.constant 0 : index
      %29 = vector.load %arg4[%c0_22, %c0_23] : memref<1x32xf32, #tpu.memory_space<vmem>>, vector<1x32xf32>
      %cst_24 = arith.constant dense<0.000000e+00> : vector<8xf32>
      %30 = vector.multi_reduction <add>, %27, %cst_24 [1] : vector<8x32xf32> to vector<8xf32>
      %31 = vector.shape_cast %30 : vector<8xf32> to vector<8x1xf32>
      %cst_25 = arith.constant 3.200000e+01 : f32
      %32 = vector.broadcast %cst_25 : f32 to vector<8x1xf32>
      %33 = arith.divf %31, %32 : vector<8x1xf32>
      %34 = vector.broadcast %33 : vector<8x1xf32> to vector<8x32xf32>
      %35 = arith.subf %27, %34 : vector<8x32xf32>
      %36 = arith.mulf %35, %35 : vector<8x32xf32>
      %cst_26 = arith.constant dense<0.000000e+00> : vector<8xf32>
      %37 = vector.multi_reduction <add>, %36, %cst_26 [1] : vector<8x32xf32> to vector<8xf32>
      %38 = vector.shape_cast %37 : vector<8xf32> to vector<8x1xf32>
      %cst_27 = arith.constant 3.200000e+01 : f32
      %39 = vector.broadcast %cst_27 : f32 to vector<8x1xf32>
      %40 = arith.divf %38, %39 : vector<8x1xf32>
      %41 = vector.broadcast %33 : vector<8x1xf32> to vector<8x32xf32>
      %42 = arith.subf %27, %41 : vector<8x32xf32>
      %cst_28 = arith.constant 9.99999974E-6 : f32
      %43 = vector.broadcast %cst_28 : f32 to vector<8x1xf32>
      %44 = arith.addf %40, %43 : vector<8x1xf32>
      %45 = math.rsqrt %44 : vector<8x1xf32>
      %46 = vector.broadcast %45 : vector<8x1xf32> to vector<8x32xf32>
      %47 = arith.mulf %42, %46 : vector<8x32xf32>
      %48 = vector.broadcast %28 : vector<1x32xf32> to vector<8x32xf32>
      %49 = arith.mulf %47, %48 : vector<8x32xf32>
      %50 = vector.broadcast %29 : vector<1x32xf32> to vector<8x32xf32>
      %51 = arith.addf %49, %50 : vector<8x32xf32>
      %52 = arith.truncf %51 : vector<8x32xf32> to vector<8x32xbf16>
      %c0_29 = arith.constant 0 : index
      %c0_30 = arith.constant 0 : index
      %53 = vector.load %arg5[%c0_29, %c0_30] : memref<32x96xbf16, #tpu.memory_space<vmem>>, vector<32x96xbf16>
      %cst_31 = arith.constant dense<0.000000e+00> : vector<8x96xf32>
      %54 = tpu.matmul %52, %53, %cst_31 {dimension_numbers = #tpu.dot_dimension_numbers<[1], [0], [0], [1], [0, 0, 1, 1], [], []>} : vector<8x32xbf16>, vector<32x96xbf16>, vector<8x96xf32> -> vector<8x96xf32>
      %c0_32 = arith.constant 0 : index
      %c0_33 = arith.constant 0 : index
      %55 = vector.load %arg6[%c0_32, %c0_33] : memref<1x96xf32, #tpu.memory_space<vmem>>, vector<1x96xf32>
      %56 = vector.broadcast %55 : vector<1x96xf32> to vector<8x96xf32>
      %57 = arith.addf %54, %56 : vector<8x96xf32>
      %58 = arith.truncf %57 : vector<8x96xf32> to vector<8x96xbf16>
      %59 = vector.shape_cast %58 : vector<8x96xbf16> to vector<1x8x96xbf16>
      %60 = vector.extract_strided_slice %59 {offsets = [0, 0, 0], sizes = [1, 8, 8], strides = [1, 1, 1]} : vector<1x8x96xbf16> to vector<1x8x8xbf16>
      %61 = vector.extract_strided_slice %59 {offsets = [0, 0, 32], sizes = [1, 8, 8], strides = [1, 1, 1]} : vector<1x8x96xbf16> to vector<1x8x8xbf16>
      %62 = vector.extract_strided_slice %59 {offsets = [0, 0, 64], sizes = [1, 8, 8], strides = [1, 1, 1]} : vector<1x8x96xbf16> to vector<1x8x8xbf16>
      "tpu.trace_start"() <{level = 10 : i32, message = "bqd,bkd->bqk"}> : () -> ()
      %cst_34 = arith.constant dense<0.000000e+00> : vector<1x8x8xf32>
      %63 = tpu.matmul %60, %61, %cst_34 {dimension_numbers = #tpu.dot_dimension_numbers<[2], [2], [1], [1], [0, 0, 0, 1, 1, 1], [0], [0]>} : vector<1x8x8xbf16>, vector<1x8x8xbf16>, vector<1x8x8xf32> -> vector<1x8x8xf32>
      "tpu.trace_stop"() : () -> ()
      %cst_35 = arith.constant dense<0xFF800000> : vector<1x8xf32>
      %64 = vector.multi_reduction <maximumf>, %63, %cst_35 [2] : vector<1x8x8xf32> to vector<1x8xf32>
      %65 = vector.shape_cast %64 : vector<1x8xf32> to vector<1x8x1xf32>
      %66 = vector.broadcast %65 : vector<1x8x1xf32> to vector<1x8x8xf32>
      %67 = arith.subf %63, %66 : vector<1x8x8xf32>
      %68 = math.exp %67 : vector<1x8x8xf32>
      %cst_36 = arith.constant dense<0.000000e+00> : vector<1x8xf32>
      %69 = vector.multi_reduction <add>, %68, %cst_36 [2] : vector<1x8x8xf32> to vector<1x8xf32>
      %70 = vector.shape_cast %69 : vector<1x8xf32> to vector<1x8x1xf32>
      %71 = tpu.reciprocal %70 {approx = true} : vector<1x8x1xf32> -> vector<1x8x1xf32>
      %72 = vector.broadcast %71 : vector<1x8x1xf32> to vector<1x8x8xf32>
      %73 = arith.mulf %68, %72 : vector<1x8x8xf32>
      %74 = arith.truncf %73 : vector<1x8x8xf32> to vector<1x8x8xbf16>
      "tpu.trace_start"() <{level = 10 : i32, message = "bqk,bkd->bqd"}> : () -> ()
      %cst_37 = arith.constant dense<0.000000e+00> : vector<1x8x8xf32>
      %75 = tpu.matmul %74, %62, %cst_37 {dimension_numbers = #tpu.dot_dimension_numbers<[2], [1], [1], [2], [0, 0, 0, 1, 1, 2], [0], [0]>} : vector<1x8x8xbf16>, vector<1x8x8xbf16>, vector<1x8x8xf32> -> vector<1x8x8xf32>
      "tpu.trace_stop"() : () -> ()
      %76 = vector.extract_strided_slice %59 {offsets = [0, 0, 8], sizes = [1, 8, 8], strides = [1, 1, 1]} : vector<1x8x96xbf16> to vector<1x8x8xbf16>
      %77 = vector.extract_strided_slice %59 {offsets = [0, 0, 40], sizes = [1, 8, 8], strides = [1, 1, 1]} : vector<1x8x96xbf16> to vector<1x8x8xbf16>
      %78 = vector.extract_strided_slice %59 {offsets = [0, 0, 72], sizes = [1, 8, 8], strides = [1, 1, 1]} : vector<1x8x96xbf16> to vector<1x8x8xbf16>
      "tpu.trace_start"() <{level = 10 : i32, message = "bqd,bkd->bqk"}> : () -> ()
      %cst_38 = arith.constant dense<0.000000e+00> : vector<1x8x8xf32>
      %79 = tpu.matmul %76, %77, %cst_38 {dimension_numbers = #tpu.dot_dimension_numbers<[2], [2], [1], [1], [0, 0, 0, 1, 1, 1], [0], [0]>} : vector<1x8x8xbf16>, vector<1x8x8xbf16>, vector<1x8x8xf32> -> vector<1x8x8xf32>
      "tpu.trace_stop"() : () -> ()
      %cst_39 = arith.constant dense<0xFF800000> : vector<1x8xf32>
      %80 = vector.multi_reduction <maximumf>, %79, %cst_39 [2] : vector<1x8x8xf32> to vector<1x8xf32>
      %81 = vector.shape_cast %80 : vector<1x8xf32> to vector<1x8x1xf32>
      %82 = vector.broadcast %81 : vector<1x8x1xf32> to vector<1x8x8xf32>
      %83 = arith.subf %79, %82 : vector<1x8x8xf32>
      %84 = math.exp %83 : vector<1x8x8xf32>
      %cst_40 = arith.constant dense<0.000000e+00> : vector<1x8xf32>
      %85 = vector.multi_reduction <add>, %84, %cst_40 [2] : vector<1x8x8xf32> to vector<1x8xf32>
      %86 = vector.shape_cast %85 : vector<1x8xf32> to vector<1x8x1xf32>
      %87 = tpu.reciprocal %86 {approx = true} : vector<1x8x1xf32> -> vector<1x8x1xf32>
      %88 = vector.broadcast %87 : vector<1x8x1xf32> to vector<1x8x8xf32>
      %89 = arith.mulf %84, %88 : vector<1x8x8xf32>
      %90 = arith.truncf %89 : vector<1x8x8xf32> to vector<1x8x8xbf16>
      "tpu.trace_start"() <{level = 10 : i32, message = "bqk,bkd->bqd"}> : () -> ()
      %cst_41 = arith.constant dense<0.000000e+00> : vector<1x8x8xf32>
      %91 = tpu.matmul %90, %78, %cst_41 {dimension_numbers = #tpu.dot_dimension_numbers<[2], [1], [1], [2], [0, 0, 0, 1, 1, 2], [0], [0]>} : vector<1x8x8xbf16>, vector<1x8x8xbf16>, vector<1x8x8xf32> -> vector<1x8x8xf32>
      "tpu.trace_stop"() : () -> ()
      %92 = vector.extract_strided_slice %59 {offsets = [0, 0, 16], sizes = [1, 8, 8], strides = [1, 1, 1]} : vector<1x8x96xbf16> to vector<1x8x8xbf16>
      %93 = vector.extract_strided_slice %59 {offsets = [0, 0, 48], sizes = [1, 8, 8], strides = [1, 1, 1]} : vector<1x8x96xbf16> to vector<1x8x8xbf16>
      %94 = vector.extract_strided_slice %59 {offsets = [0, 0, 80], sizes = [1, 8, 8], strides = [1, 1, 1]} : vector<1x8x96xbf16> to vector<1x8x8xbf16>
      "tpu.trace_start"() <{level = 10 : i32, message = "bqd,bkd->bqk"}> : () -> ()
      %cst_42 = arith.constant dense<0.000000e+00> : vector<1x8x8xf32>
      %95 = tpu.matmul %92, %93, %cst_42 {dimension_numbers = #tpu.dot_dimension_numbers<[2], [2], [1], [1], [0, 0, 0, 1, 1, 1], [0], [0]>} : vector<1x8x8xbf16>, vector<1x8x8xbf16>, vector<1x8x8xf32> -> vector<1x8x8xf32>
      "tpu.trace_stop"() : () -> ()
      %cst_43 = arith.constant dense<0xFF800000> : vector<1x8xf32>
      %96 = vector.multi_reduction <maximumf>, %95, %cst_43 [2] : vector<1x8x8xf32> to vector<1x8xf32>
      %97 = vector.shape_cast %96 : vector<1x8xf32> to vector<1x8x1xf32>
      %98 = vector.broadcast %97 : vector<1x8x1xf32> to vector<1x8x8xf32>
      %99 = arith.subf %95, %98 : vector<1x8x8xf32>
      %100 = math.exp %99 : vector<1x8x8xf32>
      %cst_44 = arith.constant dense<0.000000e+00> : vector<1x8xf32>
      %101 = vector.multi_reduction <add>, %100, %cst_44 [2] : vector<1x8x8xf32> to vector<1x8xf32>
      %102 = vector.shape_cast %101 : vector<1x8xf32> to vector<1x8x1xf32>
      %103 = tpu.reciprocal %102 {approx = true} : vector<1x8x1xf32> -> vector<1x8x1xf32>
      %104 = vector.broadcast %103 : vector<1x8x1xf32> to vector<1x8x8xf32>
      %105 = arith.mulf %100, %104 : vector<1x8x8xf32>
      %106 = arith.truncf %105 : vector<1x8x8xf32> to vector<1x8x8xbf16>
      "tpu.trace_start"() <{level = 10 : i32, message = "bqk,bkd->bqd"}> : () -> ()
      %cst_45 = arith.constant dense<0.000000e+00> : vector<1x8x8xf32>
      %107 = tpu.matmul %106, %94, %cst_45 {dimension_numbers = #tpu.dot_dimension_numbers<[2], [1], [1], [2], [0, 0, 0, 1, 1, 2], [0], [0]>} : vector<1x8x8xbf16>, vector<1x8x8xbf16>, vector<1x8x8xf32> -> vector<1x8x8xf32>
      "tpu.trace_stop"() : () -> ()
      %108 = vector.extract_strided_slice %59 {offsets = [0, 0, 24], sizes = [1, 8, 8], strides = [1, 1, 1]} : vector<1x8x96xbf16> to vector<1x8x8xbf16>
      %109 = vector.extract_strided_slice %59 {offsets = [0, 0, 56], sizes = [1, 8, 8], strides = [1, 1, 1]} : vector<1x8x96xbf16> to vector<1x8x8xbf16>
      %110 = vector.extract_strided_slice %59 {offsets = [0, 0, 88], sizes = [1, 8, 8], strides = [1, 1, 1]} : vector<1x8x96xbf16> to vector<1x8x8xbf16>
      "tpu.trace_start"() <{level = 10 : i32, message = "bqd,bkd->bqk"}> : () -> ()
      %cst_46 = arith.constant dense<0.000000e+00> : vector<1x8x8xf32>
      %111 = tpu.matmul %108, %109, %cst_46 {dimension_numbers = #tpu.dot_dimension_numbers<[2], [2], [1], [1], [0, 0, 0, 1, 1, 1], [0], [0]>} : vector<1x8x8xbf16>, vector<1x8x8xbf16>, vector<1x8x8xf32> -> vector<1x8x8xf32>
      "tpu.trace_stop"() : () -> ()
      %cst_47 = arith.constant dense<0xFF800000> : vector<1x8xf32>
      %112 = vector.multi_reduction <maximumf>, %111, %cst_47 [2] : vector<1x8x8xf32> to vector<1x8xf32>
      %113 = vector.shape_cast %112 : vector<1x8xf32> to vector<1x8x1xf32>
      %114 = vector.broadcast %113 : vector<1x8x1xf32> to vector<1x8x8xf32>
      %115 = arith.subf %111, %114 : vector<1x8x8xf32>
      %116 = math.exp %115 : vector<1x8x8xf32>
      %cst_48 = arith.constant dense<0.000000e+00> : vector<1x8xf32>
      %117 = vector.multi_reduction <add>, %116, %cst_48 [2] : vector<1x8x8xf32> to vector<1x8xf32>
      %118 = vector.shape_cast %117 : vector<1x8xf32> to vector<1x8x1xf32>
      %119 = tpu.reciprocal %118 {approx = true} : vector<1x8x1xf32> -> vector<1x8x1xf32>
      %120 = vector.broadcast %119 : vector<1x8x1xf32> to vector<1x8x8xf32>
      %121 = arith.mulf %116, %120 : vector<1x8x8xf32>
      %122 = arith.truncf %121 : vector<1x8x8xf32> to vector<1x8x8xbf16>
      "tpu.trace_start"() <{level = 10 : i32, message = "bqk,bkd->bqd"}> : () -> ()
      %cst_49 = arith.constant dense<0.000000e+00> : vector<1x8x8xf32>
      %123 = tpu.matmul %122, %110, %cst_49 {dimension_numbers = #tpu.dot_dimension_numbers<[2], [1], [1], [2], [0, 0, 0, 1, 1, 2], [0], [0]>} : vector<1x8x8xbf16>, vector<1x8x8xbf16>, vector<1x8x8xf32> -> vector<1x8x8xf32>
      "tpu.trace_stop"() : () -> ()
      %124 = tpu.concatenate %75, %91, %107, %123 in 2 : vector<1x8x8xf32>, vector<1x8x8xf32>, vector<1x8x8xf32>, vector<1x8x8xf32> -> vector<1x8x32xf32>
      %125 = vector.shape_cast %124 : vector<1x8x32xf32> to vector<8x32xf32>
      %126 = arith.truncf %125 : vector<8x32xf32> to vector<8x32xbf16>
      %c0_50 = arith.constant 0 : index
      %c0_51 = arith.constant 0 : index
      %127 = vector.load %arg7[%c0_50, %c0_51] : memref<32x32xbf16, #tpu.memory_space<vmem>>, vector<32x32xbf16>
      %cst_52 = arith.constant dense<0.000000e+00> : vector<8x32xf32>
      %128 = tpu.matmul %126, %127, %cst_52 {dimension_numbers = #tpu.dot_dimension_numbers<[1], [0], [0], [1], [0, 0, 1, 1], [], []>} : vector<8x32xbf16>, vector<32x32xbf16>, vector<8x32xf32> -> vector<8x32xf32>
      %c0_53 = arith.constant 0 : index
      %c0_54 = arith.constant 0 : index
      %129 = vector.load %arg8[%c0_53, %c0_54] : memref<1x32xf32, #tpu.memory_space<vmem>>, vector<1x32xf32>
      %130 = vector.broadcast %129 : vector<1x32xf32> to vector<8x32xf32>
      %131 = arith.addf %128, %130 : vector<8x32xf32>
      %132 = arith.addf %27, %131 : vector<8x32xf32>
      %c0_55 = arith.constant 0 : index
      %c0_56 = arith.constant 0 : index
      %133 = vector.load %arg16[%c0_55, %c0_56] : memref<8x32xf32, #tpu.memory_space<vmem>>, vector<8x32xf32>
      tpu.vector_store %arg16[%c0_55, %c0_56], %132 {strides = array<i32>} : memref<8x32xf32, #tpu.memory_space<vmem>>, vector<8x32xf32>,
      %c0_57 = arith.constant 0 : index
      %c0_58 = arith.constant 0 : index
      %134 = vector.load %arg9[%c0_57, %c0_58] : memref<1x32xf32, #tpu.memory_space<vmem>>, vector<1x32xf32>
      %c0_59 = arith.constant 0 : index
      %c0_60 = arith.constant 0 : index
      %135 = vector.load %arg10[%c0_59, %c0_60] : memref<1x32xf32, #tpu.memory_space<vmem>>, vector<1x32xf32>
      %cst_61 = arith.constant dense<0.000000e+00> : vector<8xf32>
      %136 = vector.multi_reduction <add>, %132, %cst_61 [1] : vector<8x32xf32> to vector<8xf32>
      %137 = vector.shape_cast %136 : vector<8xf32> to vector<8x1xf32>
      %cst_62 = arith.constant 3.200000e+01 : f32
      %138 = vector.broadcast %cst_62 : f32 to vector<8x1xf32>
      %139 = arith.divf %137, %138 : vector<8x1xf32>
      %140 = vector.broadcast %139 : vector<8x1xf32> to vector<8x32xf32>
      %141 = arith.subf %132, %140 : vector<8x32xf32>
      %142 = arith.mulf %141, %141 : vector<8x32xf32>
      %cst_63 = arith.constant dense<0.000000e+00> : vector<8xf32>
      %143 = vector.multi_reduction <add>, %142, %cst_63 [1] : vector<8x32xf32> to vector<8xf32>
      %144 = vector.shape_cast %143 : vector<8xf32> to vector<8x1xf32>
      %cst_64 = arith.constant 3.200000e+01 : f32
      %145 = vector.broadcast %cst_64 : f32 to vector<8x1xf32>
      %146 = arith.divf %144, %145 : vector<8x1xf32>
      %147 = vector.broadcast %139 : vector<8x1xf32> to vector<8x32xf32>
      %148 = arith.subf %132, %147 : vector<8x32xf32>
      %cst_65 = arith.constant 9.99999974E-6 : f32
      %149 = vector.broadcast %cst_65 : f32 to vector<8x1xf32>
      %150 = arith.addf %146, %149 : vector<8x1xf32>
      %151 = math.rsqrt %150 : vector<8x1xf32>
      %152 = vector.broadcast %151 : vector<8x1xf32> to vector<8x32xf32>
      %153 = arith.mulf %148, %152 : vector<8x32xf32>
      %154 = vector.broadcast %134 : vector<1x32xf32> to vector<8x32xf32>
      %155 = arith.mulf %153, %154 : vector<8x32xf32>
      %156 = vector.broadcast %135 : vector<1x32xf32> to vector<8x32xf32>
      %157 = arith.addf %155, %156 : vector<8x32xf32>
      %158 = arith.truncf %157 : vector<8x32xf32> to vector<8x32xbf16>
      %c0_66 = arith.constant 0 : index
      %c0_67 = arith.constant 0 : index
      %159 = vector.load %arg17[%c0_66, %c0_67] : memref<8x32xbf16, #tpu.memory_space<vmem>>, vector<8x32xbf16>
      tpu.vector_store %arg17[%c0_66, %c0_67], %158 {strides = array<i32>} : memref<8x32xbf16, #tpu.memory_space<vmem>>, vector<8x32xbf16>,
      %cst_68 = arith.constant 0.000000e+00 : f32
      %160 = vector.broadcast %cst_68 : f32 to vector<8x32xf32>
      %c0_69 = arith.constant 0 : index
      %c0_70 = arith.constant 0 : index
      %161 = vector.load %arg18[%c0_69, %c0_70] : memref<8x32xf32, #tpu.memory_space<vmem>>, vector<8x32xf32>
      tpu.vector_store %arg18[%c0_69, %c0_70], %160 {strides = array<i32>} : memref<8x32xf32, #tpu.memory_space<vmem>>, vector<8x32xf32>,
    } else {
    }
    %c0 = arith.constant 0 : index
    %c0_1 = arith.constant 0 : index
    %3 = vector.load %arg17[%c0, %c0_1] : memref<8x32xbf16, #tpu.memory_space<vmem>>, vector<8x32xbf16>
    %c0_2 = arith.constant 0 : index
    %c0_3 = arith.constant 0 : index
    %4 = vector.load %arg11[%c0_2, %c0_3] : memref<32x128xbf16, #tpu.memory_space<vmem>>, vector<32x128xbf16>
    %cst = arith.constant dense<0.000000e+00> : vector<8x128xf32>
    %5 = tpu.matmul %3, %4, %cst {dimension_numbers = #tpu.dot_dimension_numbers<[1], [0], [0], [1], [0, 0, 1, 1], [], []>} : vector<8x32xbf16>, vector<32x128xbf16>, vector<8x128xf32> -> vector<8x128xf32>
    %c0_4 = arith.constant 0 : index
    %c0_5 = arith.constant 0 : index
    %6 = vector.load %arg12[%c0_4, %c0_5] : memref<1x128xf32, #tpu.memory_space<vmem>>, vector<1x128xf32>
    %7 = vector.broadcast %6 : vector<1x128xf32> to vector<8x128xf32>
    %8 = arith.addf %5, %7 : vector<8x128xf32>
    %9 = arith.truncf %8 : vector<8x128xf32> to vector<8x128xbf16>
    %cst_6 = arith.constant 1.703130e+00 : bf16
    %10 = vector.broadcast %cst_6 : bf16 to vector<8x128xbf16>
    %11 = arith.mulf %10, %9 : vector<8x128xbf16>
    %12 = arith.negf %11 : vector<8x128xbf16>
    %13 = math.exp %12 : vector<8x128xbf16>
    %cst_7 = arith.constant 1.000000e+00 : bf16
    %14 = vector.broadcast %cst_7 : bf16 to vector<8x128xbf16>
    %15 = arith.addf %14, %13 : vector<8x128xbf16>
    %16 = arith.divf %14, %15 : vector<8x128xbf16>
    %17 = arith.mulf %9, %16 : vector<8x128xbf16>
    %c0_8 = arith.constant 0 : index
    %c0_9 = arith.constant 0 : index
    %18 = vector.load %arg18[%c0_8, %c0_9] : memref<8x32xf32, #tpu.memory_space<vmem>>, vector<8x32xf32>
    %c0_10 = arith.constant 0 : index
    %c0_11 = arith.constant 0 : index
    %19 = vector.load %arg13[%c0_10, %c0_11] : memref<128x32xbf16, #tpu.memory_space<vmem>>, vector<128x32xbf16>
    %cst_12 = arith.constant dense<0.000000e+00> : vector<8x32xf32>
    %20 = tpu.matmul %17, %19, %cst_12 {dimension_numbers = #tpu.dot_dimension_numbers<[1], [0], [0], [1], [0, 0, 1, 1], [], []>} : vector<8x128xbf16>, vector<128x32xbf16>, vector<8x32xf32> -> vector<8x32xf32>
    %21 = arith.addf %18, %20 : vector<8x32xf32>
    %c0_13 = arith.constant 0 : index
    %c0_14 = arith.constant 0 : index
    %22 = vector.load %arg18[%c0_13, %c0_14] : memref<8x32xf32, #tpu.memory_space<vmem>>, vector<8x32xf32>
    tpu.vector_store %arg18[%c0_13, %c0_14], %21 {strides = array<i32>} : memref<8x32xf32, #tpu.memory_space<vmem>>, vector<8x32xf32>,
    %c0_i32_15 = arith.constant 0 : i32
    %23 = arith.cmpi eq, %arg1, %c0_i32_15 : i32
    %24 = arith.extui %23 : i1 to i32
    %c0_i32_16 = arith.constant 0 : i32
    %25 = arith.cmpi ne, %24, %c0_i32_16 : i32
    scf.if %25 {
      %c0_17 = arith.constant 0 : index
      %c0_18 = arith.constant 0 : index
      %26 = vector.load %arg16[%c0_17, %c0_18] : memref<8x32xf32, #tpu.memory_space<vmem>>, vector<8x32xf32>
      %c0_19 = arith.constant 0 : index
      %c0_20 = arith.constant 0 : index
      %27 = vector.load %arg18[%c0_19, %c0_20] : memref<8x32xf32, #tpu.memory_space<vmem>>, vector<8x32xf32>
      %28 = arith.addf %26, %27 : vector<8x32xf32>
      %c0_21 = arith.constant 0 : index
      %c0_22 = arith.constant 0 : index
      %29 = vector.load %arg14[%c0_21, %c0_22] : memref<1x32xf32, #tpu.memory_space<vmem>>, vector<1x32xf32>
      %30 = vector.broadcast %29 : vector<1x32xf32> to vector<8x32xf32>
      %31 = arith.addf %28, %30 : vector<8x32xf32>
      %32 = vector.shape_cast %31 : vector<8x32xf32> to vector<1x8x32xf32>
      %c0_23 = arith.constant 0 : index
      %c0_24 = arith.constant 0 : index
      %c0_25 = arith.constant 0 : index
      %33 = vector.load %arg15[%c0_23, %c0_24, %c0_25] : memref<1x8x32xf32, #tpu.memory_space<vmem>>, vector<1x8x32xf32>
      tpu.vector_store %arg15[%c0_23, %c0_24, %c0_25], %32 {strides = array<i32>} : memref<1x8x32xf32, #tpu.memory_space<vmem>>, vector<1x8x32xf32>,
    } else {
    }
    return
  }
  func.func @transform_0(%arg0: i32, %arg1: i32) -> (i32, i32, i32) {
    %c0_i32 = arith.constant 0 : i32
    %c0_i32_0 = arith.constant 0 : i32
    %c0_i32_1 = arith.constant 0 : i32
    return %arg0, %c0_i32, %c0_i32_0 : i32, i32, i32
  }
  func.func @transform_1(%arg0: i32, %arg1: i32) -> (i32, i32) {
    %c0_i32 = arith.constant 0 : i32
    %c0_i32_0 = arith.constant 0 : i32
    %c0_i32_1 = arith.constant 0 : i32
    return %c0_i32, %c0_i32_0 : i32, i32
  }
  func.func @transform_2(%arg0: i32, %arg1: i32) -> (i32, i32) {
    %c0_i32 = arith.constant 0 : i32
    %c0_i32_0 = arith.constant 0 : i32
    %c0_i32_1 = arith.constant 0 : i32
    return %c0_i32, %c0_i32_0 : i32, i32
  }
  func.func @transform_3(%arg0: i32, %arg1: i32) -> (i32, i32) {
    %c0_i32 = arith.constant 0 : i32
    %c0_i32_0 = arith.constant 0 : i32
    %c0_i32_1 = arith.constant 0 : i32
    return %c0_i32, %c0_i32_0 : i32, i32
  }
  func.func @transform_4(%arg0: i32, %arg1: i32) -> (i32, i32) {
    %c0_i32 = arith.constant 0 : i32
    %c0_i32_0 = arith.constant 0 : i32
    %c0_i32_1 = arith.constant 0 : i32
    return %c0_i32, %c0_i32_0 : i32, i32
  }
  func.func @transform_5(%arg0: i32, %arg1: i32) -> (i32, i32) {
    %c0_i32 = arith.constant 0 : i32
    %c0_i32_0 = arith.constant 0 : i32
    %c0_i32_1 = arith.constant 0 : i32
    return %c0_i32, %c0_i32_0 : i32, i32
  }
  func.func @transform_6(%arg0: i32, %arg1: i32) -> (i32, i32) {
    %c0_i32 = arith.constant 0 : i32
    %c0_i32_0 = arith.constant 0 : i32
    %c0_i32_1 = arith.constant 0 : i32
    return %c0_i32, %c0_i32_0 : i32, i32
  }
  func.func @transform_7(%arg0: i32, %arg1: i32) -> (i32, i32) {
    %c0_i32 = arith.constant 0 : i32
    %c0_i32_0 = arith.constant 0 : i32
    %c0_i32_1 = arith.constant 0 : i32
    return %c0_i32, %c0_i32_0 : i32, i32
  }
  func.func @transform_8(%arg0: i32, %arg1: i32) -> (i32, i32) {
    %c0_i32 = arith.constant 0 : i32
    %c0_i32_0 = arith.constant 0 : i32
    %c0_i32_1 = arith.constant 0 : i32
    return %c0_i32, %c0_i32_0 : i32, i32
  }
  func.func @transform_9(%arg0: i32, %arg1: i32) -> (i32, i32) {
    %c0_i32 = arith.constant 0 : i32
    %c0_i32_0 = arith.constant 0 : i32
    return %c0_i32, %arg1 : i32, i32
  }
  func.func @transform_10(%arg0: i32, %arg1: i32) -> (i32, i32) {
    %c0_i32 = arith.constant 0 : i32
    %c0_i32_0 = arith.constant 0 : i32
    return %c0_i32, %arg1 : i32, i32
  }
  func.func @transform_11(%arg0: i32, %arg1: i32) -> (i32, i32) {
    %c0_i32 = arith.constant 0 : i32
    %c0_i32_0 = arith.constant 0 : i32
    return %arg1, %c0_i32 : i32, i32
  }
  func.func @transform_12(%arg0: i32, %arg1: i32) -> (i32, i32) {
    %c0_i32 = arith.constant 0 : i32
    %c0_i32_0 = arith.constant 0 : i32
    %c0_i32_1 = arith.constant 0 : i32
    return %c0_i32, %c0_i32_0 : i32, i32
  }
  func.func @transform_13(%arg0: i32, %arg1: i32) -> (i32, i32, i32) {
    %c0_i32 = arith.constant 0 : i32
    %c0_i32_0 = arith.constant 0 : i32
    %c0_i32_1 = arith.constant 0 : i32
    return %arg0, %c0_i32, %c0_i32_0 : i32, i32, i32
  }
}

</mosaic_0001>

<bundles_post_ra>
// kernel: run.2
= control target key start
LH: loop header
LB: loop body
LE: loop exit
PB: predicated region body
PF: predicated region fallthrough
CT: control target
= control target key end

     0   :  { %s1444_s25 = smov 0   ;;  %s1446_s26 = smov 0   ;;  %s1613_s0 = inlined_call_operand.vmem [shape: f32[2,8,32], index: 0, kind: input, shape index: {}]   ;;  %s1614_s1 = inlined_call_operand.vmem [shape: f32[1,32], index: 1, kind: input, shape index: {}]   ;;  %s1615_s2 = inlined_call_operand.vmem [shape: f32[1,32], index: 2, kind: input, shape index: {}]   ;;  %s1616_s3 = inlined_call_operand.vmem [shape: bf16[32,96], index: 3, kind: input, shape index: {}]   ;;  %s1617_s4 = inlined_call_operand.vmem [shape: f32[1,96], index: 4, kind: input, shape index: {}]   ;;  %s1618_s5 = inlined_call_operand.vmem [shape: bf16[32,32], index: 5, kind: input, shape index: {}]   ;;  %s1619_s6 = inlined_call_operand.vmem [shape: f32[1,32], index: 6, kind: input, shape index: {}]   ;;  %s1620_s7 = inlined_call_operand.vmem [shape: f32[1,32], index: 7, kind: input, shape index: {}]   ;;  %s1621_s8 = inlined_call_operand.vmem [shape: f32[1,32], index: 8, kind: input, shape index: {}]   ;;  %s1622_s9 = inlined_call_operand.vmem [shape: bf16[32,128], index: 9, kind: input, shape index: {}]   ;;  %s1623_s10 = inlined_call_operand.vmem [shape: f32[1,128], index: 10, kind: input, shape index: {}]   ;;  %s1624_s11 = inlined_call_operand.vmem [shape: bf16[128,32], index: 11, kind: input, shape index: {}]   ;;  %s1625_s12 = inlined_call_operand.vmem [shape: f32[1,32], index: 12, kind: input, shape index: {}]   ;;  %s1626_s13 = inlined_call_operand.vmem [shape: f32[2,8,32], index: 13, kind: output, shape index: {}]  }
   0x1   :  { %s1448_s27 = smov 0  }
   0x2 LB: > { %s35_s28 = sadd.s32 1, %s1351_s26  ;;  %p1170_p0 = scmp.ge.s32.totalorder %s1355_s27, 1  ;;  %s1355_s27 = sphi %s1448_s27, %s23_s27   ;;  %s1351_s26 = sphi %s1446_s26, %s1628_s26   ;;  %s1347_s25 = sphi %s1444_s25, %s1627_s25  }
   0x3   : > { %p37_p1 = scmp.ge.s32.totalorder %s35_s28, 2  ;;  %p426_p2 = scmp.lt.s32.totalorder %s1355_s27, 3 }
   0x5   : > { %s1630_s28 = smov (%p37_p1, %s35_s28), 0  ;;  %p427_p3 = pnand %p1170_p0, %p426_p2 }
   0x6   : > { %p480_p4 = scmp.lt.s32.totalorder (!%p427_p3), %s1347_s25, 1  ;;  %s1358_s14 = smov (!%p427_p3), 88  }
   0x7   : > { %430 = sbr.rel (%p427_p3) target bundleno = 2355 (0x933), region = 72  ;;  %s1360_s16 = smov (!%p427_p3), 96  }
   0x8   : > { %s1361_s17 = smov (!%p427_p3), 72   ;;  %s1362_s18 = smov (!%p427_p3), 80  }
   0x9   : > { %s1363_s19 = smov (!%p427_p3), 120   ;;  %s1364_s20 = smov (!%p427_p3), 104  }
   0xa   : > { %s1365_s21 = smov (!%p427_p3), 112   ;;  %s1366_s22 = smov (!%p427_p3), 40  }
   0xb   : > { %s1367_s23 = smov (!%p427_p3), 48   ;;  %s1368_s24 = smov (!%p427_p3), 56  }
   0xc   : > { %s1632_s25 = smov (!%p480_p4, %s1347_s25), 1  ;;  %vm510_vm0 = vcmask 261120   ;;  %v1357_v2 = vmov 32.0   ;;  %v1243_v14 = vld [vmem:[%s1616_s3 + $0x8] sm:$0xff]  ;;  %v1242_v15 = vld [vmem:[%s1616_s3] sm:$0xff]  ;;  %vm628_vm5 = vcmask 1043456  }
   0xd   : > { %s1171_s29 = sshll.u32 %s1632_s25, 3  ;;  %1305 = vrcp.f32 %v1357_v2  ;;  %578 = vmatpush.bf16.msra.mxu0 %v1243_v14  ;;  %v1297_v25 = vld [vmem:[%s1614_s1] ss:$0 sm:$0xff]  ;;  %vm591_vm6 = vcmask 64512   ;;  %s1369_s30 = smov 16   ;;  %vm826_vm7 = vcmask 130048  }
   0xe   : > { %s483_s15 = scalar_lea.vmem %s1613_s0, %s1171_s29  ;;  %v1298_v28 = vld [vmem:[%s1615_s2] ss:$0 sm:$0xff]  ;;  %vm828_vm8 = vcmask 195584   ;;  %vm902_vm12 = vcmask 257024  }
   0xf   : > { %v1470_v0 = vld [vmem:[%s483_s15] sm:$0xff]  ;;  %s1359_s15 = smov 64  }
  0x10   : > { %v511_v1 = vsel %vm510_vm0, %v1470_v0, 0.0  ;;  %v1299_v32 = vld [vmem:[%s1617_s4] ss:$0 sm:$0xff] }
  0x11   : > { %512 = vadd.xlane.f32.xlu0 %v511_v1  ;;  %579 = vmatpush.bf16.msra.mxu0 %v1242_v15 }
  0x13   : > { %v1306_v3 = vpop.eup %1305 }
  0x14   : > { %v515_v4 = vmul.f32 32.0, %v1306_v3  ;;  %vm519_vm1 = vweird.f32 %v1306_v3 }
  0x16   : > { %v516_v5 = vsub.f32 1.0, %v515_v4 }
  0x18   : > { %v517_v6 = vmul.f32 %v1306_v3, %v516_v5 }
  0x1a   : > { %v518_v7 = vadd.f32 %v1306_v3, %v517_v6 }
  0x1c   : > { %v1474_v8 = vsel %vm519_vm1, %v1306_v3, %v518_v7 }
  0x84   : > { %v513_v9 = vpop.xlane.xlu0 %512 }
  0x85   : > { %v521_v10 = vmul.f32 %v1474_v8, %v513_v9 }
  0x87   : > { %v522_v11 = vsub.f32 %v1470_v0, %v521_v10 }
  0x89   : > { %v523_v12 = vmul.f32 %v522_v11, %v522_v11 }
  0x8b   : > { %v524_v13 = vsel %vm510_vm0, %v523_v12, 0.0 }
  0x8c   : > { %525 = vadd.xlane.f32.xlu0 %v524_v13 }
  0xff   : > { %v526_v16 = vpop.xlane.xlu0 %525 }
 0x100   : > { %v527_v17 = vmul.f32 %v526_v16, %v1474_v8 }
 0x102   : > { %v528_v18 = vadd.f32 1e-05, %v527_v17 }
 0x104   : > { %1307 = vrsqrt.f32 %v528_v18  ;;  %vm535_vm3 = vweird.f32 %v528_v18 }
 0x10a   : > { %v1308_v19 = vpop.eup %1307 }
 0x10b   : > { %v530_v20 = vmul.f32 %v1308_v19, %v528_v18  ;;  %vm536_vm2 = vweird.f32 %v1308_v19 }
 0x10c   : > { %vm537_vm4 = vmor %vm535_vm3, %vm536_vm2 }
 0x10d   : > { %v531_v21 = vmul.f32 %v1308_v19, %v530_v20 }
 0x10f   : > { %v532_v22 = vmul.f32 0.5, %v531_v21 }
 0x111   : > { %v533_v23 = vsub.f32 1.5, %v532_v22 }
 0x113   : > { %v534_v24 = vmul.f32 %v1308_v19, %v533_v23 }
 0x115   : > { %v538_v26 = vsel %vm537_vm4, %v1308_v19, %v534_v24 }
 0x116   : > { %v539_v27 = vmul.f32 %v538_v26, %v522_v11 }
 0x118   : > { %v543_v29 = vmul.f32 %v1297_v25, %v539_v27 }
 0x11a   : > { %v547_v30 = vadd.f32 %v1298_v28, %v543_v29 }
 0x11c   : > { %v548_v31 = vpack.c.bf16 %v547_v30, %v547_v30 }
 0x11e   : > { %1181 = vmatmul.msk.bf16.vlgmr.msra.gmra.mxu0 %vm510_vm0, %v548_v31 }
 0x19b   : > { %v581_v33 = vpop.f32.mrf.mxu0 }
 0x19c   : > { %v582_v34 = vadd.f32 %v1299_v32, %v581_v33 }
 0x19e   : > { %v585_v35 = vpack.c.bf16 %v582_v34, %v582_v34 }
 0x1a0   : > { %v587_v36 = vunpack.c.l.b16 %v585_v35 }
 0x1a2   : > { %v1496_v37 = vpack.c.b16 %v587_v36, %v587_v36 }
 0x1a3   : > { %v583_v38 = vpop.f32.mrf.mxu0 }
 0x1a4   : > { %647 = vrot.lane.b32.xlu0 %v1496_v37, %s1358_s14  ;;  %623 = vrot.lane.b32.xlu2 %v1496_v37, %s1359_s15  ;;  %s1370_s14 = smov 8   ;;  %s1371_s15 = smov 24  }
 0x1a5   : > { %589 = vrot.lane.b32.xlu1 %v1496_v37, %s1360_s16  ;;  %s500_s16 = scalar_lea.vmem %s1626_s13, %s1171_s29 }
 0x1ac   : > { %759 = vrot.lane.b32.xlu0 %v1496_v37, %s1361_s17 }
 0x1b4   : > { %703 = vrot.lane.b32.xlu0 %v1496_v37, %s1362_s18 }
 0x1fe   : > { %v624_v39 = vpop.permute.xlu2 %623 }
 0x1ff   : > { %v630_v40 = vsel %vm628_vm5, %v624_v39, 0 }
 0x200   : > { %639 = vmatpush.bf16.msra.mxu2 %v630_v40 }
 0x216   : > { %v648_v41 = vpop.permute.xlu0 %647 }
 0x217   : > { %v590_v42 = vpop.permute.xlu1 %589  ;;  %v653_v43 = vsel %vm591_vm6, %v648_v41, 0 }
 0x218   : > { %v596_v44 = vsel %vm591_vm6, %v590_v42, 0  ;;  %662 = vmatpush.bf16.xpose.msrb.mxu2 %v653_v43 }
 0x219   : > { %605 = vmatpush.bf16.xpose.msra.mxu1 %v596_v44 }
 0x21e   : > { %v760_v45 = vpop.permute.xlu0 %759 }
 0x21f   : > { %v765_v46 = vsel %vm591_vm6, %v760_v45, 0 }
 0x220   : > { %1182 = vmatmul.msk.bf16.vlgmr.msra.gmra.mxu1 %vm591_vm6, %v585_v35  ;;  %774 = vmatpush.bf16.xpose.msra.mxu3 %v765_v46 }
 0x226   : > { %v704_v47 = vpop.permute.xlu0 %703 }
 0x227   : > { %v709_v48 = vsel %vm591_vm6, %v704_v47, 0 }
 0x228   : > { %718 = vmatpush.bf16.xpose.msrb.mxu0 %v709_v48 }
 0x29d   : > { %v607_v49 = vpop.f32.mrf.mxu1 }
 0x29e   : > { %v611_v50 = vsel %vm591_vm6, %v607_v49, -inf }
 0x29f   : > { %612 = vmax.xlane.f32.xlu1 %v611_v50 }
 0x2a5   : > { %v609_v51 = vpop.f32.mrf.mxu1 }
 0x312   : > { %v613_v52 = vpop.xlane.xlu1 %612 }
 0x313   : > { %v614_v53 = vsub.f32 %v607_v49, %v613_v52  ;;  %v1245_v52 = vld [vmem:[%s1618_s5 + $0x8] sm:$0xff] }
 0x314   : > { %860 = vmatpush.bf16.msra.mxu0 %v1245_v52 }
 0x315   : > { %v615_v54 = vmul.f32 1.442695, %v614_v53  ;;  %v1244_v53 = vld [vmem:[%s1618_s5] sm:$0xff] }
 0x317   : > { %1309 = vpow2.f32 %v615_v54 }
 0x318   : > { %861 = vmatpush.bf16.msra.mxu0 %v1244_v53 }
 0x31d   : > { %v1310_v55 = vpop.eup %1309 }
 0x31e   : > { %v617_v56 = vsel %vm591_vm6, %v1310_v55, 0.0 }
 0x31f   : > { %618 = vadd.xlane.f32.xlu2 %v617_v56 }
 0x337   : > { %645 = vrot.lane.b32.xlu2 %v1496_v37, %s1363_s19 }
 0x33f   : > { %757 = vrot.lane.b32.xlu2 %v1496_v37, %s1364_s20 }
 0x347   : > { %701 = vrot.lane.b32.xlu2 %v1496_v37, %s1365_s21 }
 0x392   : > { %v619_v57 = vpop.xlane.xlu2 %618 }
 0x393   : > { %1311 = vrcp.f32 %v619_v57 }
 0x399   : > { %v1312_v58 = vpop.eup %1311 }
 0x39a   : > { %v646_v59 = vpop.permute.xlu2 %645  ;;  %v621_v60 = vmul.f32 %v1312_v58, %v1310_v55 }
 0x39c   : > { %v622_v61 = vpack.c.bf16 %v621_v60, %v621_v60 }
 0x39e   : > { %1183 = vmatmul.msk.bf16.vlgmr.msra.gmra.mxu2 %vm591_vm6, %v622_v61  ;;  %v1300_v61 = vld [vmem:[%s1619_s6] ss:$0 sm:$0xff] }
 0x3a2   : > { %v758_v62 = vpop.permute.xlu2 %757 }
 0x3a3   : > { %1188 = vmatmul.msk.bf16.vlgmr.msra.gmra.mxu3 %vm591_vm6, %v758_v62 }
 0x3aa   : > { %v702_v63 = vpop.permute.xlu2 %701 }
 0x3ab   : > { %1186 = vmatmul.msk.bf16.vlgmr.msrb.gmra.mxu0 %vm591_vm6, %v702_v63 }
 0x3ae   : > { %1184 = vmatmul.msk.bf16.vlgmr.msrb.gmra.mxu2 %vm591_vm6, %v646_v59 }
 0x421   : > { %v1518_v1 = vpop.f32.mrf.mxu2 }
 0x426   : > { %v776_v2 = vpop.f32.mrf.mxu3 }
 0x427   : > { %v780_v3 = vsel %vm591_vm6, %v776_v2, -inf }
 0x428   : > { %781 = vmax.xlane.f32.xlu0 %v780_v3  ;;  %v720_v4 = vpop.f32.mrf.mxu0 }
 0x429   : > { %v643_v5 = vpop.f32.mrf.mxu2  ;;  %v724_v6 = vsel %vm591_vm6, %v720_v4, -inf }
 0x42a   : > { %725 = vmax.xlane.f32.xlu2 %v724_v6 }
 0x42e   : > { %v778_v7 = vpop.f32.mrf.mxu3 }
 0x430   : > { %v722_v9 = vpop.f32.mrf.mxu0 }
 0x431   : > { %v664_v10 = vpop.f32.mrf.mxu2 }
 0x432   : > { %v668_v11 = vsel %vm591_vm6, %v664_v10, -inf }
 0x433   : > { %669 = vmax.xlane.f32.xlu1 %v668_v11 }
 0x439   : > { %v666_v12 = vpop.f32.mrf.mxu2 }
 0x442   : > { %792 = vrot.lane.b32.xlu2 %v1496_v37, %s1366_s22 }
 0x49b   : > { %v782_v23 = vpop.xlane.xlu0 %781 }
 0x49c   : > { %v783_v24 = vsub.f32 %v776_v2, %v782_v23 }
 0x49d   : > { %v726_v13 = vpop.xlane.xlu2 %725 }
 0x49e   : > { %v727_v14 = vsub.f32 %v720_v4, %v726_v13  ;;  %v784_v25 = vmul.f32 1.442695, %v783_v24 }
 0x4a0   : > { %v728_v15 = vmul.f32 1.442695, %v727_v14 }
 0x4a2   : > { %1313 = vpow2.f32 %v728_v15 }
 0x4a5   : > { %v793_v36 = vpop.permute.xlu2 %792 }
 0x4a6   : > { %v670_v16 = vpop.xlane.xlu1 %669  ;;  %v798_v40 = vsel %vm628_vm5, %v793_v36, 0 }
 0x4a7   : > { %v671_v17 = vsub.f32 %v664_v10, %v670_v16  ;;  %v1247_v10 = vld [vmem:[%s1622_s9 + $0x8] sm:$0xff] }
 0x4a8   : > { %v1314_v18 = vpop.eup %1313 }
 0x4a9   : > { %v672_v19 = vmul.f32 1.442695, %v671_v17  ;;  %v730_v20 = vsel %vm591_vm6, %v1314_v18, 0.0 }
 0x4aa   : > { %731 = vadd.xlane.f32.xlu0 %v730_v20  ;;  %v1301_v20 = vld [vmem:[%s1620_s7] ss:$0 sm:$0xff] }
 0x4ab   : > { %1315 = vpow2.f32 %v672_v19 }
 0x4ac   : > { %1317 = vpow2.f32 %v784_v25 }
 0x4b1   : > { %v1316_v21 = vpop.eup %1315 }
 0x4b2   : > { %v674_v22 = vsel %vm591_vm6, %v1316_v21, 0.0  ;;  %v1318_v26 = vpop.eup %1317 }
 0x4b3   : > { %675 = vadd.xlane.f32.xlu1 %v674_v22  ;;  %v786_v27 = vsel %vm591_vm6, %v1318_v26, 0.0 }
 0x4be   : > { %736 = vrot.lane.b32.xlu0 %v1496_v37, %s1367_s23 }
 0x4cc   : > { %680 = vrot.lane.b32.xlu1 %v1496_v37, %s1368_s24 }
 0x4f6   : > { %787 = vadd.xlane.f32.xlu1 %v786_v27  ;;  %v1255_v27 = vld [vmem:[%s1624_s11 + $0x38] sm:$0xff] }
 0x4f7   : > { %1032 = vmatpush.bf16.msrb.mxu3 %v1255_v27 }
 0x51d   : > { %v732_v28 = vpop.xlane.xlu0 %731 }
 0x51e   : > { %1319 = vrcp.f32 %v732_v28  ;;  %v1254_v28 = vld [vmem:[%s1624_s11 + $0x30] sm:$0xff] }
 0x51f   : > { %1033 = vmatpush.bf16.msrb.mxu3 %v1254_v28 }
 0x524   : > { %v1320_v29 = vpop.eup %1319 }
 0x525   : > { %v734_v30 = vmul.f32 %v1320_v29, %v1314_v18  ;;  %v1253_v29 = vld [vmem:[%s1624_s11 + $0x28] sm:$0xff] }
 0x526   : > { %v676_v32 = vpop.xlane.xlu1 %675  ;;  %1034 = vmatpush.bf16.msrb.mxu3 %v1253_v29 }
 0x527   : > { %v735_v34 = vpack.c.bf16 %v734_v30, %v734_v30  ;;  %1321 = vrcp.f32 %v676_v32  ;;  %v1303_v30 = vld [vmem:[%s1623_s10] ss:$0 sm:$0xff] }
 0x52d   : > { %v1322_v35 = vpop.eup %1321 }
 0x52e   : > { %v678_v37 = vmul.f32 %v1322_v35, %v1316_v21  ;;  %v1251_v35 = vld [vmem:[%s1624_s11 + $0x18] sm:$0xff] }
 0x530   : > { %v737_v31 = vpop.permute.xlu0 %736  ;;  %v679_v41 = vpack.c.bf16 %v678_v37, %v678_v37 }
 0x531   : > { %v742_v33 = vsel %vm628_vm5, %v737_v31, 0  ;;  %v1252_v31 = vld [vmem:[%s1624_s11 + $0x20] sm:$0xff] }
 0x532   : > { %751 = vmatpush.bf16.msrb.mxu1 %v742_v33  ;;  %1035 = vmatpush.bf16.msrb.mxu3 %v1252_v31 }
 0x535   : > { %1187 = vmatmul.msk.bf16.vlgmr.msrb.gmra.mxu1 %vm591_vm6, %v735_v34 }
 0x536   : > { %936 = vmatpush.bf16.msra.mxu1 %v1247_v10  ;;  %1036 = vmatpush.bf16.msrb.mxu3 %v1251_v35 }
 0x53e   : > { %v681_v38 = vpop.permute.xlu1 %680 }
 0x53f   : > { %v686_v39 = vsel %vm628_vm5, %v681_v38, 0  ;;  %v1250_v38 = vld [vmem:[%s1624_s11 + $0x10] sm:$0xff] }
 0x540   : > { %695 = vmatpush.bf16.msra.mxu2 %v686_v39  ;;  %1037 = vmatpush.bf16.msrb.mxu3 %v1250_v38 }
 0x543   : > { %1185 = vmatmul.msk.bf16.vlgmr.msra.gmra.mxu2 %vm591_vm6, %v679_v41 }
 0x544   : > { %807 = vmatpush.bf16.msrb.mxu2 %v798_v40 }
 0x569   : > { %v788_v42 = vpop.xlane.xlu1 %787 }
 0x56a   : > { %1323 = vrcp.f32 %v788_v42  ;;  %v1249_v42 = vld [vmem:[%s1624_s11 + $0x8] sm:$0xff] }
 0x56b   : > { %1038 = vmatpush.bf16.msrb.mxu3 %v1249_v42 }
 0x570   : > { %v1324_v43 = vpop.eup %1323 }
 0x571   : > { %v790_v44 = vmul.f32 %v1324_v43, %v1318_v26 }
 0x573   : > { %v791_v45 = vpack.c.bf16 %v790_v44, %v790_v44 }
 0x575   : > { %1189 = vmatmul.msk.bf16.vlgmr.msrb.gmra.mxu2 %vm591_vm6, %v791_v45  ;;  %v1248_v45 = vld [vmem:[%s1624_s11] sm:$0xff] }
 0x576   : > { %1039 = vmatpush.bf16.msrb.mxu3 %v1248_v45 }
 0x5b2   : > { %v753_v46 = vpop.f32.mrf.mxu1 }
 0x5b3   : > { %818 = vrot.lane.b32.xlu0 %v753_v46, %s1369_s30  ;;  %v1372_v46 = vmov 0.0  }
 0x5b4   : > { %904 = vst.msk [vmem:[#allocation4] sm:$0xff] %vm510_vm0, %v1372_v46 }
 0x5ba   : > { %v755_v47 = vpop.f32.mrf.mxu1 }
 0x5c6   : > { %v697_v48 = vpop.f32.mrf.mxu2 }
 0x5c7   : > { %814 = vrot.lane.b32.xlu2 %v697_v48, %s1370_s14 }
 0x5ce   : > { %v699_v49 = vpop.f32.mrf.mxu2 }
 0x5f8   : > { %v809_v50 = vpop.f32.mrf.mxu2 }
 0x5f9   : > { %822 = vrot.lane.b32.xlu2 %v809_v50, %s1371_s15 }
 0x600   : > { %v811_v51 = vpop.f32.mrf.mxu2 }
 0x621   : > { %v815_v54 = vpop.permute.xlu2 %814 }
 0x622   : > { %v825_v56 = vsel %vm591_vm6, %v1518_v1, %v815_v54  ;;  %v1373_v54 = vmov 1065369472  }
 0x625   : > { %v819_v55 = vpop.permute.xlu0 %818 }
 0x626   : > { %v827_v57 = vsel %vm826_vm7, %v825_v56, %v819_v55  ;;  %v955_v55 = vunpack.c.h.bf16 %v1373_v54  ;;  %v956_v56 = vunpack.c.l.bf16 %v1373_v54 }
 0x653   : > { %v823_v58 = vpop.permute.xlu2 %822 }
 0x654   : > { %v829_v59 = vsel %vm828_vm8, %v827_v57, %v823_v58 }
 0x655   : > { %v830_v60 = vpack.c.bf16 %v829_v59, %v829_v59 }
 0x657   : > { %1198 = vmatmul.msk.bf16.vlgmr.msra.gmra.mxu0 %vm510_vm0, %v830_v60 }
 0x6d4   : > { %v863_v62 = vpop.f32.mrf.mxu0 }
 0x6d5   : > { %v864_v63 = vadd.f32 %v1300_v61, %v863_v62 }
 0x6d7   : > { %v867_v2 = vadd.f32 %v864_v63, %v1470_v0  ;;  %v1246_v0 = vld [vmem:[%s1622_s9] sm:$0xff] }
 0x6d8   : > { %937 = vmatpush.bf16.msra.mxu1 %v1246_v0 }
 0x6d9   : > { %868 = vst.msk [vmem:[#allocation2] sm:$0xff] %vm510_vm0, %v867_v2  ;;  %v871_v3 = vsel %vm510_vm0, %v867_v2, 0.0 }
 0x6da   : > { %872 = vadd.xlane.f32.xlu0 %v871_v3  ;;  %v967_v3 = vld [vmem:[#allocation4] sm:$0xff] }
 0x6dc   : > { %v865_v1 = vpop.f32.mrf.mxu0 }
 0x74d   : > { %v873_v4 = vpop.xlane.xlu0 %872 }
 0x74e   : > { %v874_v5 = vmul.f32 %v873_v4, %v1474_v8 }
 0x750   : > { %v875_v6 = vsub.f32 %v867_v2, %v874_v5 }
 0x752   : > { %v876_v7 = vmul.f32 %v875_v6, %v875_v6 }
 0x754   : > { %v877_v9 = vsel %vm510_vm0, %v876_v7, 0.0  ;;  %v1050_v7 = vld [vmem:[#allocation2] sm:$0xff] }
 0x755   : > { %878 = vadd.xlane.f32.xlu1 %v877_v9 }
 0x7c8   : > { %v879_v11 = vpop.xlane.xlu1 %878 }
 0x7c9   : > { %v880_v12 = vmul.f32 %v879_v11, %v1474_v8  ;;  %v1302_v8 = vld [vmem:[%s1621_s8] ss:$0 sm:$0xff] }
 0x7cb   : > { %v881_v13 = vadd.f32 1e-05, %v880_v12 }
 0x7cd   : > { %1325 = vrsqrt.f32 %v881_v13  ;;  %vm888_vm10 = vweird.f32 %v881_v13 }
 0x7d3   : > { %v1326_v14 = vpop.eup %1325 }
 0x7d4   : > { %v883_v15 = vmul.f32 %v1326_v14, %v881_v13  ;;  %vm889_vm9 = vweird.f32 %v1326_v14 }
 0x7d5   : > { %vm890_vm11 = vmor %vm888_vm10, %vm889_vm9 }
 0x7d6   : > { %v884_v16 = vmul.f32 %v1326_v14, %v883_v15 }
 0x7d8   : > { %v885_v17 = vmul.f32 0.5, %v884_v16 }
 0x7da   : > { %v886_v18 = vsub.f32 1.5, %v885_v17 }
 0x7dc   : > { %v887_v19 = vmul.f32 %v1326_v14, %v886_v18 }
 0x7de   : > { %v891_v21 = vsel %vm890_vm11, %v1326_v14, %v887_v19 }
 0x7df   : > { %v892_v22 = vmul.f32 %v891_v21, %v875_v6  ;;  %v1304_v6 = vld [vmem:[%s1625_s12] ss:$0 sm:$0xff] }
 0x7e1   : > { %v896_v23 = vmul.f32 %v1301_v20, %v892_v22 }
 0x7e3   : > { %v900_v24 = vadd.f32 %v1302_v8, %v896_v23 }
 0x7e5   : > { %v901_v25 = vpack.c.bf16 %v900_v24, %v900_v24 }
 0x7e7   : > { %903 = vst.msk [vmem:[#allocation3] sm:$0xf] %vm902_vm12, %v901_v25 }
 0x7ee   : > { %v905_v26 = vld [vmem:[#allocation3] sm:$0xf] }
 0x7ef   : > { %1207 = vmatmul.msk.bf16.vlgmr.msra.gmra.mxu1 %vm510_vm0, %v905_v26 }
 0x86c   : > { %v939_v32 = vpop.f32.mrf.mxu1 }
 0x86d   : > { %v940_v33 = vadd.f32 %v1303_v30, %v939_v32 }
 0x86f   : > { %v943_v34 = vpack.c.bf16 %v940_v33, %v940_v33 }
 0x871   : > { %v944_v36 = vunpack.c.l.bf16 %v943_v34 }
 0x873   : > { %v945_v37 = vmul.f32 1.703125, %v944_v36 }
 0x874   : > { %v941_v39 = vpop.f32.mrf.mxu1 }
 0x875   : > { %v946_v40 = vpack.c.bf16 %v945_v37, %v945_v37 }
 0x877   : > { %v947_v41 = vxor.u32 2147516416, %v946_v40 }
 0x879   : > { %v948_v43 = vunpack.c.l.bf16 %v947_v41 }
 0x87b   : > { %v949_v44 = vmul.f32 1.442695, %v948_v43 }
 0x87d   : > { %1327 = vpow2.f32 %v949_v44 }
 0x883   : > { %v1328_v47 = vpop.eup %1327 }
 0x884   : > { %v951_v48 = vpack.c.bf16 %v1328_v47, %v1328_v47 }
 0x886   : > { %v952_v49 = vunpack.c.l.bf16 %v951_v48 }
 0x888   : > { %v953_v50 = vadd.f32 1.0, %v952_v49 }
 0x88a   : > { %v954_v51 = vpack.c.bf16 %v953_v50, %v953_v50 }
 0x88c   : > { %v957_v52 = vunpack.c.h.bf16 %v954_v51  ;;  %v958_v53 = vunpack.c.l.bf16 %v954_v51 }
 0x88e   : > { %1329 = vrcp.f32 %v957_v52 }
 0x88f   : > { %1331 = vrcp.f32 %v958_v53 }
 0x894   : > { %v1330_v57 = vpop.eup %1329 }
 0x895   : > { %v1332_v58 = vpop.eup %1331  ;;  %v960_v59 = vmul.f32 %v1330_v57, %v955_v55 }
 0x896   : > { %v962_v60 = vmul.f32 %v1332_v58, %v956_v56 }
 0x898   : > { %v963_v61 = vpack.c.bf16 %v960_v59, %v962_v60 }
 0x89a   : > { %v964_v62 = vunpack.c.l.bf16 %v963_v61 }
 0x89c   : > { %v965_v63 = vmul.f32 %v964_v62, %v944_v36 }
 0x89e   : > { %v966_v2 = vpack.c.bf16 %v965_v63, %v965_v63 }
 0x8a0   : > { %1040 = vmatmul.bf16.vlgmr.msrb.gmra.mxu3 %v966_v2 }
 0x923   : > { %v1041_v1 = vpop.f32.mrf.mxu3 }
 0x924   : > { %v1045_v4 = vadd.f32 %v1041_v1, %v967_v3 }
 0x926   : > { %1046 = vst.msk [vmem:[#allocation4] sm:$0xff] %vm510_vm0, %v1045_v4 }
 0x92b   : > { %v1043_v5 = vpop.f32.mrf.mxu3 }
 0x92d   : > { %v1051_v9 = vld [vmem:[#allocation4] sm:$0xff] }
 0x92e   : > { %v1052_v10 = vadd.f32 %v1051_v9, %v1050_v7 }
 0x930   : > { %v1057_v11 = vadd.f32 %v1304_v6, %v1052_v10 }
 0x932   : > { %1058 = vst.msk [vmem:[%s500_s16] sm:$0xff] %vm510_vm0, %v1057_v11 }
 0x933 PF: > { %s23_s27 = sadd.s32 1, %s1355_s27   ;;  %s1627_s25 = smov %s1351_s26 }
 0x934   : > { %p20_p5 = scmp.ge.s32.totalorder %s23_s27, 4   ;;  %s1628_s26 = smov %s1630_s28 }
 0x936   :  { %22 = sbr.rel (!%p20_p5) target bundleno = 2 (0x2), region = 119 }

</bundles_post_ra>
